<compile_context>
chip_gen: v7x
topology: tpu7x:2x2x1
jax: 0.10.0
libtpu: 0.0.40
codegen_flags: <defaults>
</compile_context>

<pallas_src>
import functools

import jax
import jax.numpy as jnp
from jax import lax
from jax.experimental import pallas as pl
from jax.experimental.pallas import tpu as pltpu


# ------------------------------- Fused kernel ------------------------------- #

def _gmm_fused_kernel(x_ref, wqkv_ref, wproj_ref, bproj_ref, o_ref, *,
                      scale, num_heads, head_dim, mxu_dtype):
    """One grid step = one batch element.

    x_ref     : (1, N, C)
    wqkv_ref  : (C, 3C)   fused qkv weight, columns ordered [q_h0..q_hH-1 | k_* | v_*]
    wproj_ref : (C, C)    output projection weight
    bproj_ref : (1, C)    output projection bias
    o_ref     : (1, N, C)
    """
    x = x_ref[0]                                       # (N, C)
    n = x.shape[0]
    c = wproj_ref.shape[0]
    d = head_dim
    mdt = mxu_dtype
    f32 = jnp.float32

    # Fused QKV projection: one MXU push, f32 accumulation.
    qkv = jnp.dot(x.astype(mdt), wqkv_ref[...].astype(mdt),
                  preferred_element_type=f32)          # (N, 3C) f32

    neg_half_scale = -0.5 * scale
    ones_col = jnp.ones((n, 1), f32)                   # hoisted out of the head loop
    nhs_col = jnp.full((n, 1), neg_half_scale, f32)

    head_outs = []
    for h in range(num_heads):                         # static unroll (fine at H=4, D=8)
        q = qkv[:, h * d:(h + 1) * d]                  # (N, D) f32
        k = qkv[:, c + h * d:c + (h + 1) * d]          # (N, D) f32
        v = qkv[:, 2 * c + h * d:2 * c + (h + 1) * d]  # (N, D) f32

        qn = jnp.sum(q * q, axis=-1, keepdims=True)    # (N, 1)
        kn = jnp.sum(k * k, axis=-1, keepdims=True)    # (N, 1)

        # Augmented cross matmul:  q~ . k~ == -scale/2 * (||q||^2 + ||k||^2 - 2 q.k)
        q_aug = jnp.concatenate([scale * q, neg_half_scale * qn, nhs_col], axis=-1)
        k_aug = jnp.concatenate([k, ones_col, kn], axis=-1)            # (N, D+2)
        logits = lax.dot_general(q_aug.astype(mdt), k_aug.astype(mdt),
                                 (((1,), (1,)), ((), ())),
                                 preferred_element_type=f32)           # (N, N) f32
        # gpytorch _sq_dist clamp_min(0)  <=>  logits <= 0
        e = jnp.exp(jnp.minimum(logits, 0.0))                          # (N, N) f32, <= 1

        # Value matmul and softmax denominator from one MXU push: e @ [v | 1].
        v_aug = jnp.concatenate([v, ones_col], axis=-1)                # (N, D+1)
        uv = jnp.dot(e.astype(mdt), v_aug.astype(mdt),
                     preferred_element_type=f32)                       # (N, D+1) f32
        inv = pl.reciprocal(uv[:, d:d + 1] + 1e-6, approx=True)       # (N, 1), EUP
        head_outs.append(uv[:, :d] * inv)                              # (N, D)

    # Single full-width output projection over concatenated heads.
    hc = jnp.concatenate(head_outs, axis=-1)                           # (N, C) f32
    out = jnp.dot(hc.astype(mdt), wproj_ref[...].astype(mdt),
                  preferred_element_type=f32)                          # (N, C) f32
    out = out + bproj_ref[...].astype(f32)                             # (1, C) broadcast
    o_ref[0] = out.astype(o_ref.dtype)


# ------------------------------ Forward wrapper ----------------------------- #

def gmm_attention_forward(x, w_qkv, w_proj, b_proj, num_heads,
                          mxu_dtype=jnp.bfloat16):
    """GMMAttention forward. qkv_bias=False is assumed (no qkv bias is accepted).

    x      : (B, N, C)
    w_qkv  : (C, 3C)  stored (in, out) so the projection is x @ w_qkv
    w_proj : (C, C)   stored (in, out)
    b_proj : (C,)
    mxu_dtype : dtype fed to the MXU (accumulation is always f32). bf16 is recommended on
                v6e/v7x; use jnp.float32 for tighter numerics / v5e parity checks.
    """
    B, N, C = x.shape
    assert C % num_heads == 0
    D = C // num_heads
    scale = float(D) ** -0.5
    bp = b_proj.reshape(1, C)

    kern = functools.partial(_gmm_fused_kernel, scale=scale, num_heads=num_heads,
                             head_dim=D, mxu_dtype=mxu_dtype)
    return pl.pallas_call(
        kern,
        out_shape=jax.ShapeDtypeStruct((B, N, C), x.dtype),
        grid=(B,),
        in_specs=[
            pl.BlockSpec((1, N, C), lambda b: (b, 0, 0)),
            pl.BlockSpec((C, 3 * C), lambda b: (0, 0)),
            pl.BlockSpec((C, C), lambda b: (0, 0)),
            pl.BlockSpec((1, C), lambda b: (0, 0)),
        ],
        out_specs=pl.BlockSpec((1, N, C), lambda b: (b, 0, 0)),
        compiler_params=pltpu.CompilerParams(
            dimension_semantics=("parallel",),   # B >= 2 steps -> both v7x TensorCores
        ),
    )(x, w_qkv, w_proj, bp)


# ------------------------------- Pure-JAX reference ------------------------- #

def gmm_attention_reference(x, w_qkv, w_proj, b_proj, num_heads):
    B, N, C = x.shape
    D = C // num_heads
    scale = float(D) ** -0.5
    qkv = x @ w_qkv                                                  # qkv_bias=False
    qkv = qkv.reshape(B, N, 3, num_heads, D).transpose(2, 0, 3, 1, 4)
    q, k, v = qkv[0], qkv[1], qkv[2]
    diff = q[..., :, None, :] - k[..., None, :, :]
    sq = jnp.maximum(jnp.sum(diff * diff, axis=-1), 0.0)
    e = jnp.exp((-scale / 2.0) * sq)
    attn = e / (jnp.sum(e, axis=-1, keepdims=True) + 1e-6)
    out = jnp.einsum("bhnm,bhmd->bhnd", attn, v)
    out = out.transpose(0, 2, 1, 3).reshape(B, N, C)
    return out @ w_proj + b_proj


# ----------------------------------- Main ----------------------------------- #

if __name__ == "__main__":
    B, N, C, H = 2, 16, 32, 4  # D = C // H = 8
    key = jax.random.PRNGKey(0)
    kx, kqkv, kp, kpb = jax.random.split(key, 4)

    x = jax.random.normal(kx, (B, N, C), dtype=jnp.float32)
    w_qkv = 0.02 * jax.random.normal(kqkv, (C, 3 * C), dtype=jnp.float32)
    w_proj = 0.02 * jax.random.normal(kp, (C, C), dtype=jnp.float32)
    b_proj = 0.02 * jax.random.normal(kpb, (C,), dtype=jnp.float32)

    ref = gmm_attention_reference(x, w_qkv, w_proj, b_proj, H)

    # 1) f32 MXU operands: tight correctness check (only approximations are the EUP
    #    reciprocal and the quadratic-expansion squared distance).
    out_f32 = gmm_attention_forward(x, w_qkv, w_proj, b_proj, H, mxu_dtype=jnp.float32)
    out_f32 = jax.block_until_ready(out_f32)
    assert out_f32.shape == (B, N, C)
    assert jnp.allclose(out_f32, ref, rtol=1e-2, atol=1e-3), "f32-MXU mismatch vs reference"

    # 2) default bf16 MXU operands (v6e/v7x recommendation): loose check — quadratic
    #    expansion in bf16 trades precision for throughput (see perf-review concern).
    out_bf16 = gmm_attention_forward(x, w_qkv, w_proj, b_proj, H)
    out_bf16 = jax.block_until_ready(out_bf16)
    assert out_bf16.shape == (B, N, C)
    assert bool(jnp.max(jnp.abs(out_bf16 - ref)) < 2e-2), "bf16-MXU mismatch vs reference"

    print("KERNEL_OK")
</pallas_src>

<mosaic_0001>
module attributes {stable_mosaic.version = 11 : i64} {
  func.func @_gmm_fused_kernel(%arg0: i32, %arg1: memref<1x16x32xf32, #tpu.memory_space<vmem>>, %arg2: memref<32x96xf32, #tpu.memory_space<vmem>>, %arg3: memref<32x32xf32, #tpu.memory_space<vmem>>, %arg4: memref<1x32xf32, #tpu.memory_space<vmem>>, %arg5: memref<1x16x32xf32, #tpu.memory_space<vmem>>) attributes {dimension_semantics = [#tpu.dimension_semantics<parallel>], iteration_bounds = array<i64: 2>, scalar_prefetch = 0 : i64, scratch_operands = 0 : i64, tpu.core_type = #tpu.core_type<tc>, window_params = [{transform_indices = @transform_0, window_bounds = array<i64: 1, 16, 32>}, {pipeline_mode = #tpu.pipeline_mode<synchronous>, transform_indices = @transform_1, window_bounds = array<i64: 32, 96>}, {pipeline_mode = #tpu.pipeline_mode<synchronous>, transform_indices = @transform_2, window_bounds = array<i64: 32, 32>}, {pipeline_mode = #tpu.pipeline_mode<synchronous>, transform_indices = @transform_3, window_bounds = array<i64: 1, 32>}, {transform_indices = @transform_4, window_bounds = array<i64: 1, 16, 32>}]} {
    %c0 = arith.constant 0 : index
    %c0_0 = arith.constant 0 : index
    %c0_1 = arith.constant 0 : index
    %0 = vector.load %arg1[%c0, %c0_0, %c0_1] : memref<1x16x32xf32, #tpu.memory_space<vmem>>, vector<1x16x32xf32>
    %1 = vector.shape_cast %0 : vector<1x16x32xf32> to vector<16x32xf32>
    %c0_2 = arith.constant 0 : index
    %c0_3 = arith.constant 0 : index
    %2 = vector.load %arg2[%c0_2, %c0_3] : memref<32x96xf32, #tpu.memory_space<vmem>>, vector<32x96xf32>
    %cst = arith.constant dense<0.000000e+00> : vector<16x96xf32>
    %3 = tpu.matmul %1, %2, %cst {dimension_numbers = #tpu.dot_dimension_numbers<[1], [0], [0], [1], [0, 0, 1, 1], [], []>} : vector<16x32xf32>, vector<32x96xf32>, vector<16x96xf32> -> vector<16x96xf32>
    %cst_4 = arith.constant 1.000000e+00 : f32
    %4 = vector.broadcast %cst_4 : f32 to vector<16x1xf32>
    %cst_5 = arith.constant -0.176776692 : f32
    %5 = vector.broadcast %cst_5 : f32 to vector<16x1xf32>
    %6 = vector.extract_strided_slice %3 {offsets = [0, 0], sizes = [16, 8], strides = [1, 1]} : vector<16x96xf32> to vector<16x8xf32>
    %7 = vector.extract_strided_slice %3 {offsets = [0, 32], sizes = [16, 8], strides = [1, 1]} : vector<16x96xf32> to vector<16x8xf32>
    %8 = vector.extract_strided_slice %3 {offsets = [0, 64], sizes = [16, 8], strides = [1, 1]} : vector<16x96xf32> to vector<16x8xf32>
    %9 = arith.mulf %6, %6 : vector<16x8xf32>
    %cst_6 = arith.constant dense<0.000000e+00> : vector<16xf32>
    %10 = vector.multi_reduction <add>, %9, %cst_6 [1] : vector<16x8xf32> to vector<16xf32>
    %11 = vector.shape_cast %10 : vector<16xf32> to vector<16x1xf32>
    %12 = arith.mulf %7, %7 : vector<16x8xf32>
    %cst_7 = arith.constant dense<0.000000e+00> : vector<16xf32>
    %13 = vector.multi_reduction <add>, %12, %cst_7 [1] : vector<16x8xf32> to vector<16xf32>
    %14 = vector.shape_cast %13 : vector<16xf32> to vector<16x1xf32>
    %cst_8 = arith.constant 0.353553385 : f32
    %15 = vector.broadcast %cst_8 : f32 to vector<16x8xf32>
    %16 = arith.mulf %15, %6 : vector<16x8xf32>
    %cst_9 = arith.constant -0.176776692 : f32
    %17 = vector.broadcast %cst_9 : f32 to vector<16x1xf32>
    %18 = arith.mulf %17, %11 : vector<16x1xf32>
    %19 = tpu.concatenate %16, %18, %5 in 1 : vector<16x8xf32>, vector<16x1xf32>, vector<16x1xf32> -> vector<16x10xf32>
    %20 = tpu.concatenate %7, %4, %14 in 1 : vector<16x8xf32>, vector<16x1xf32>, vector<16x1xf32> -> vector<16x10xf32>
    %cst_10 = arith.constant dense<0.000000e+00> : vector<16x16xf32>
    %21 = tpu.matmul %19, %20, %cst_10 {dimension_numbers = #tpu.dot_dimension_numbers<[1], [1], [0], [0], [0, 0, 1, 0], [], []>} : vector<16x10xf32>, vector<16x10xf32>, vector<16x16xf32> -> vector<16x16xf32>
    %cst_11 = arith.constant 0.000000e+00 : f32
    %22 = vector.broadcast %cst_11 : f32 to vector<16x16xf32>
    %23 = arith.minimumf %21, %22 : vector<16x16xf32>
    %24 = math.exp %23 : vector<16x16xf32>
    %25 = tpu.concatenate %8, %4 in 1 : vector<16x8xf32>, vector<16x1xf32> -> vector<16x9xf32>
    %cst_12 = arith.constant dense<0.000000e+00> : vector<16x9xf32>
    %26 = tpu.matmul %24, %25, %cst_12 {dimension_numbers = #tpu.dot_dimension_numbers<[1], [0], [0], [1], [0, 0, 1, 1], [], []>} : vector<16x16xf32>, vector<16x9xf32>, vector<16x9xf32> -> vector<16x9xf32>
    %27 = vector.extract_strided_slice %26 {offsets = [0, 8], sizes = [16, 1], strides = [1, 1]} : vector<16x9xf32> to vector<16x1xf32>
    %cst_13 = arith.constant 9.99999997E-7 : f32
    %28 = vector.broadcast %cst_13 : f32 to vector<16x1xf32>
    %29 = arith.addf %27, %28 : vector<16x1xf32>
    %30 = tpu.reciprocal %29 {approx = true} : vector<16x1xf32> -> vector<16x1xf32>
    %31 = vector.extract_strided_slice %26 {offsets = [0, 0], sizes = [16, 8], strides = [1, 1]} : vector<16x9xf32> to vector<16x8xf32>
    %32 = vector.broadcast %30 : vector<16x1xf32> to vector<16x8xf32>
    %33 = arith.mulf %31, %32 : vector<16x8xf32>
    %34 = vector.extract_strided_slice %3 {offsets = [0, 8], sizes = [16, 8], strides = [1, 1]} : vector<16x96xf32> to vector<16x8xf32>
    %35 = vector.extract_strided_slice %3 {offsets = [0, 40], sizes = [16, 8], strides = [1, 1]} : vector<16x96xf32> to vector<16x8xf32>
    %36 = vector.extract_strided_slice %3 {offsets = [0, 72], sizes = [16, 8], strides = [1, 1]} : vector<16x96xf32> to vector<16x8xf32>
    %37 = arith.mulf %34, %34 : vector<16x8xf32>
    %cst_14 = arith.constant dense<0.000000e+00> : vector<16xf32>
    %38 = vector.multi_reduction <add>, %37, %cst_14 [1] : vector<16x8xf32> to vector<16xf32>
    %39 = vector.shape_cast %38 : vector<16xf32> to vector<16x1xf32>
    %40 = arith.mulf %35, %35 : vector<16x8xf32>
    %cst_15 = arith.constant dense<0.000000e+00> : vector<16xf32>
    %41 = vector.multi_reduction <add>, %40, %cst_15 [1] : vector<16x8xf32> to vector<16xf32>
    %42 = vector.shape_cast %41 : vector<16xf32> to vector<16x1xf32>
    %cst_16 = arith.constant 0.353553385 : f32
    %43 = vector.broadcast %cst_16 : f32 to vector<16x8xf32>
    %44 = arith.mulf %43, %34 : vector<16x8xf32>
    %cst_17 = arith.constant -0.176776692 : f32
    %45 = vector.broadcast %cst_17 : f32 to vector<16x1xf32>
    %46 = arith.mulf %45, %39 : vector<16x1xf32>
    %47 = tpu.concatenate %44, %46, %5 in 1 : vector<16x8xf32>, vector<16x1xf32>, vector<16x1xf32> -> vector<16x10xf32>
    %48 = tpu.concatenate %35, %4, %42 in 1 : vector<16x8xf32>, vector<16x1xf32>, vector<16x1xf32> -> vector<16x10xf32>
    %cst_18 = arith.constant dense<0.000000e+00> : vector<16x16xf32>
    %49 = tpu.matmul %47, %48, %cst_18 {dimension_numbers = #tpu.dot_dimension_numbers<[1], [1], [0], [0], [0, 0, 1, 0], [], []>} : vector<16x10xf32>, vector<16x10xf32>, vector<16x16xf32> -> vector<16x16xf32>
    %cst_19 = arith.constant 0.000000e+00 : f32
    %50 = vector.broadcast %cst_19 : f32 to vector<16x16xf32>
    %51 = arith.minimumf %49, %50 : vector<16x16xf32>
    %52 = math.exp %51 : vector<16x16xf32>
    %53 = tpu.concatenate %36, %4 in 1 : vector<16x8xf32>, vector<16x1xf32> -> vector<16x9xf32>
    %cst_20 = arith.constant dense<0.000000e+00> : vector<16x9xf32>
    %54 = tpu.matmul %52, %53, %cst_20 {dimension_numbers = #tpu.dot_dimension_numbers<[1], [0], [0], [1], [0, 0, 1, 1], [], []>} : vector<16x16xf32>, vector<16x9xf32>, vector<16x9xf32> -> vector<16x9xf32>
    %55 = vector.extract_strided_slice %54 {offsets = [0, 8], sizes = [16, 1], strides = [1, 1]} : vector<16x9xf32> to vector<16x1xf32>
    %cst_21 = arith.constant 9.99999997E-7 : f32
    %56 = vector.broadcast %cst_21 : f32 to vector<16x1xf32>
    %57 = arith.addf %55, %56 : vector<16x1xf32>
    %58 = tpu.reciprocal %57 {approx = true} : vector<16x1xf32> -> vector<16x1xf32>
    %59 = vector.extract_strided_slice %54 {offsets = [0, 0], sizes = [16, 8], strides = [1, 1]} : vector<16x9xf32> to vector<16x8xf32>
    %60 = vector.broadcast %58 : vector<16x1xf32> to vector<16x8xf32>
    %61 = arith.mulf %59, %60 : vector<16x8xf32>
    %62 = vector.extract_strided_slice %3 {offsets = [0, 16], sizes = [16, 8], strides = [1, 1]} : vector<16x96xf32> to vector<16x8xf32>
    %63 = vector.extract_strided_slice %3 {offsets = [0, 48], sizes = [16, 8], strides = [1, 1]} : vector<16x96xf32> to vector<16x8xf32>
    %64 = vector.extract_strided_slice %3 {offsets = [0, 80], sizes = [16, 8], strides = [1, 1]} : vector<16x96xf32> to vector<16x8xf32>
    %65 = arith.mulf %62, %62 : vector<16x8xf32>
    %cst_22 = arith.constant dense<0.000000e+00> : vector<16xf32>
    %66 = vector.multi_reduction <add>, %65, %cst_22 [1] : vector<16x8xf32> to vector<16xf32>
    %67 = vector.shape_cast %66 : vector<16xf32> to vector<16x1xf32>
    %68 = arith.mulf %63, %63 : vector<16x8xf32>
    %cst_23 = arith.constant dense<0.000000e+00> : vector<16xf32>
    %69 = vector.multi_reduction <add>, %68, %cst_23 [1] : vector<16x8xf32> to vector<16xf32>
    %70 = vector.shape_cast %69 : vector<16xf32> to vector<16x1xf32>
    %cst_24 = arith.constant 0.353553385 : f32
    %71 = vector.broadcast %cst_24 : f32 to vector<16x8xf32>
    %72 = arith.mulf %71, %62 : vector<16x8xf32>
    %cst_25 = arith.constant -0.176776692 : f32
    %73 = vector.broadcast %cst_25 : f32 to vector<16x1xf32>
    %74 = arith.mulf %73, %67 : vector<16x1xf32>
    %75 = tpu.concatenate %72, %74, %5 in 1 : vector<16x8xf32>, vector<16x1xf32>, vector<16x1xf32> -> vector<16x10xf32>
    %76 = tpu.concatenate %63, %4, %70 in 1 : vector<16x8xf32>, vector<16x1xf32>, vector<16x1xf32> -> vector<16x10xf32>
    %cst_26 = arith.constant dense<0.000000e+00> : vector<16x16xf32>
    %77 = tpu.matmul %75, %76, %cst_26 {dimension_numbers = #tpu.dot_dimension_numbers<[1], [1], [0], [0], [0, 0, 1, 0], [], []>} : vector<16x10xf32>, vector<16x10xf32>, vector<16x16xf32> -> vector<16x16xf32>
    %cst_27 = arith.constant 0.000000e+00 : f32
    %78 = vector.broadcast %cst_27 : f32 to vector<16x16xf32>
    %79 = arith.minimumf %77, %78 : vector<16x16xf32>
    %80 = math.exp %79 : vector<16x16xf32>
    %81 = tpu.concatenate %64, %4 in 1 : vector<16x8xf32>, vector<16x1xf32> -> vector<16x9xf32>
    %cst_28 = arith.constant dense<0.000000e+00> : vector<16x9xf32>
    %82 = tpu.matmul %80, %81, %cst_28 {dimension_numbers = #tpu.dot_dimension_numbers<[1], [0], [0], [1], [0, 0, 1, 1], [], []>} : vector<16x16xf32>, vector<16x9xf32>, vector<16x9xf32> -> vector<16x9xf32>
    %83 = vector.extract_strided_slice %82 {offsets = [0, 8], sizes = [16, 1], strides = [1, 1]} : vector<16x9xf32> to vector<16x1xf32>
    %cst_29 = arith.constant 9.99999997E-7 : f32
    %84 = vector.broadcast %cst_29 : f32 to vector<16x1xf32>
    %85 = arith.addf %83, %84 : vector<16x1xf32>
    %86 = tpu.reciprocal %85 {approx = true} : vector<16x1xf32> -> vector<16x1xf32>
    %87 = vector.extract_strided_slice %82 {offsets = [0, 0], sizes = [16, 8], strides = [1, 1]} : vector<16x9xf32> to vector<16x8xf32>
    %88 = vector.broadcast %86 : vector<16x1xf32> to vector<16x8xf32>
    %89 = arith.mulf %87, %88 : vector<16x8xf32>
    %90 = vector.extract_strided_slice %3 {offsets = [0, 24], sizes = [16, 8], strides = [1, 1]} : vector<16x96xf32> to vector<16x8xf32>
    %91 = vector.extract_strided_slice %3 {offsets = [0, 56], sizes = [16, 8], strides = [1, 1]} : vector<16x96xf32> to vector<16x8xf32>
    %92 = vector.extract_strided_slice %3 {offsets = [0, 88], sizes = [16, 8], strides = [1, 1]} : vector<16x96xf32> to vector<16x8xf32>
    %93 = arith.mulf %90, %90 : vector<16x8xf32>
    %cst_30 = arith.constant dense<0.000000e+00> : vector<16xf32>
    %94 = vector.multi_reduction <add>, %93, %cst_30 [1] : vector<16x8xf32> to vector<16xf32>
    %95 = vector.shape_cast %94 : vector<16xf32> to vector<16x1xf32>
    %96 = arith.mulf %91, %91 : vector<16x8xf32>
    %cst_31 = arith.constant dense<0.000000e+00> : vector<16xf32>
    %97 = vector.multi_reduction <add>, %96, %cst_31 [1] : vector<16x8xf32> to vector<16xf32>
    %98 = vector.shape_cast %97 : vector<16xf32> to vector<16x1xf32>
    %cst_32 = arith.constant 0.353553385 : f32
    %99 = vector.broadcast %cst_32 : f32 to vector<16x8xf32>
    %100 = arith.mulf %99, %90 : vector<16x8xf32>
    %cst_33 = arith.constant -0.176776692 : f32
    %101 = vector.broadcast %cst_33 : f32 to vector<16x1xf32>
    %102 = arith.mulf %101, %95 : vector<16x1xf32>
    %103 = tpu.concatenate %100, %102, %5 in 1 : vector<16x8xf32>, vector<16x1xf32>, vector<16x1xf32> -> vector<16x10xf32>
    %104 = tpu.concatenate %91, %4, %98 in 1 : vector<16x8xf32>, vector<16x1xf32>, vector<16x1xf32> -> vector<16x10xf32>
    %cst_34 = arith.constant dense<0.000000e+00> : vector<16x16xf32>
    %105 = tpu.matmul %103, %104, %cst_34 {dimension_numbers = #tpu.dot_dimension_numbers<[1], [1], [0], [0], [0, 0, 1, 0], [], []>} : vector<16x10xf32>, vector<16x10xf32>, vector<16x16xf32> -> vector<16x16xf32>
    %cst_35 = arith.constant 0.000000e+00 : f32
    %106 = vector.broadcast %cst_35 : f32 to vector<16x16xf32>
    %107 = arith.minimumf %105, %106 : vector<16x16xf32>
    %108 = math.exp %107 : vector<16x16xf32>
    %109 = tpu.concatenate %92, %4 in 1 : vector<16x8xf32>, vector<16x1xf32> -> vector<16x9xf32>
    %cst_36 = arith.constant dense<0.000000e+00> : vector<16x9xf32>
    %110 = tpu.matmul %108, %109, %cst_36 {dimension_numbers = #tpu.dot_dimension_numbers<[1], [0], [0], [1], [0, 0, 1, 1], [], []>} : vector<16x16xf32>, vector<16x9xf32>, vector<16x9xf32> -> vector<16x9xf32>
    %111 = vector.extract_strided_slice %110 {offsets = [0, 8], sizes = [16, 1], strides = [1, 1]} : vector<16x9xf32> to vector<16x1xf32>
    %cst_37 = arith.constant 9.99999997E-7 : f32
    %112 = vector.broadcast %cst_37 : f32 to vector<16x1xf32>
    %113 = arith.addf %111, %112 : vector<16x1xf32>
    %114 = tpu.reciprocal %113 {approx = true} : vector<16x1xf32> -> vector<16x1xf32>
    %115 = vector.extract_strided_slice %110 {offsets = [0, 0], sizes = [16, 8], strides = [1, 1]} : vector<16x9xf32> to vector<16x8xf32>
    %116 = vector.broadcast %114 : vector<16x1xf32> to vector<16x8xf32>
    %117 = arith.mulf %115, %116 : vector<16x8xf32>
    %118 = tpu.concatenate %33, %61, %89, %117 in 1 : vector<16x8xf32>, vector<16x8xf32>, vector<16x8xf32>, vector<16x8xf32> -> vector<16x32xf32>
    %c0_38 = arith.constant 0 : index
    %c0_39 = arith.constant 0 : index
    %119 = vector.load %arg3[%c0_38, %c0_39] : memref<32x32xf32, #tpu.memory_space<vmem>>, vector<32x32xf32>
    %cst_40 = arith.constant dense<0.000000e+00> : vector<16x32xf32>
    %120 = tpu.matmul %118, %119, %cst_40 {dimension_numbers = #tpu.dot_dimension_numbers<[1], [0], [0], [1], [0, 0, 1, 1], [], []>} : vector<16x32xf32>, vector<32x32xf32>, vector<16x32xf32> -> vector<16x32xf32>
    %c0_41 = arith.constant 0 : index
    %c0_42 = arith.constant 0 : index
    %121 = vector.load %arg4[%c0_41, %c0_42] : memref<1x32xf32, #tpu.memory_space<vmem>>, vector<1x32xf32>
    %122 = vector.broadcast %121 : vector<1x32xf32> to vector<16x32xf32>
    %123 = arith.addf %120, %122 : vector<16x32xf32>
    %c0_43 = arith.constant 0 : index
    %c0_44 = arith.constant 0 : index
    %c0_45 = arith.constant 0 : index
    %124 = vector.load %arg5[%c0_43, %c0_44, %c0_45] : memref<1x16x32xf32, #tpu.memory_space<vmem>>, vector<1x16x32xf32>
    %125 = vector.shape_cast %124 : vector<1x16x32xf32> to vector<16x32xf32>
    %126 = vector.shape_cast %123 : vector<16x32xf32> to vector<1x16x32xf32>
    tpu.vector_store %arg5[%c0_43, %c0_44, %c0_45], %126 {strides = array<i32>} : memref<1x16x32xf32, #tpu.memory_space<vmem>>, vector<1x16x32xf32>,
    return
  }
  func.func @transform_0(%arg0: i32) -> (i32, i32, i32) {
    %c0_i32 = arith.constant 0 : i32
    %c0_i32_0 = arith.constant 0 : i32
    %c0_i32_1 = arith.constant 0 : i32
    return %arg0, %c0_i32, %c0_i32_0 : i32, i32, i32
  }
  func.func @transform_1(%arg0: i32) -> (i32, i32) {
    %c0_i32 = arith.constant 0 : i32
    %c0_i32_0 = arith.constant 0 : i32
    %c0_i32_1 = arith.constant 0 : i32
    return %c0_i32, %c0_i32_0 : i32, i32
  }
  func.func @transform_2(%arg0: i32) -> (i32, i32) {
    %c0_i32 = arith.constant 0 : i32
    %c0_i32_0 = arith.constant 0 : i32
    %c0_i32_1 = arith.constant 0 : i32
    return %c0_i32, %c0_i32_0 : i32, i32
  }
  func.func @transform_3(%arg0: i32) -> (i32, i32) {
    %c0_i32 = arith.constant 0 : i32
    %c0_i32_0 = arith.constant 0 : i32
    %c0_i32_1 = arith.constant 0 : i32
    return %c0_i32, %c0_i32_0 : i32, i32
  }
  func.func @transform_4(%arg0: i32) -> (i32, i32, i32) {
    %c0_i32 = arith.constant 0 : i32
    %c0_i32_0 = arith.constant 0 : i32
    %c0_i32_1 = arith.constant 0 : i32
    return %arg0, %c0_i32, %c0_i32_0 : i32, i32, i32
  }
}

</mosaic_0001>

<bundles_post_ra>
// kernel: tpu_custom_call.1
= control target key start
LH: loop header
LB: loop body
LE: loop exit
PB: predicated region body
PF: predicated region fallthrough
CT: control target
= control target key end

     0   :  { %9 = vsyncpa [#allocation3], 0  ;;  %s2566_s0 = inlined_call_operand.hbm [shape: f32[2,16,32], index: 0, kind: input, shape index: {}]   ;;  %s2567_s1 = inlined_call_operand.hbm [shape: f32[32,96], index: 1, kind: input, shape index: {}]   ;;  %s2568_s2 = inlined_call_operand.hbm [shape: f32[32,32], index: 2, kind: input, shape index: {}]   ;;  %s2569_s3 = inlined_call_operand.vmem [shape: f32[1,32], index: 3, kind: input, shape index: {}]   ;;  %s2570_s4 = inlined_call_operand.hbm [shape: f32[2,16,32], index: 4, kind: output, shape index: {}]  }
   0x1   :  { %11 = vsyncpa [#allocation3 + $0x1], 0 }
   0x2   :  { %12 = vsyncpa [#allocation6], 0 }
   0x3   :  { %13 = vsyncpa [#allocation4], 0 }
   0x4   :  { %15 = vsyncpa [#allocation4 + $0x1], 0  ;;  %s2133_s15 = smov 0   ;;  %s2135_s16 = smov 0  }
   0x5   :  { %s2137_s17 = smov 0   ;;  %s2139_s18 = smov 0  }
   0x6 LB: > { %s2154_s19 = sadd.s32 4294967295, %s2084_s18   ;;  %s1542_s20 = sadd.s32 4294967294, %s2084_s18   ;;  %s2084_s18 = sphi %s2139_s18, %s2592_s18   ;;  %s2080_s17 = sphi %s2137_s17, %s2591_s17   ;;  %s2076_s16 = sphi %s2135_s16, %s2590_s16   ;;  %s2072_s15 = sphi %s2133_s15, %s2589_s15  }
   0x7   : > { %p41_p0 = scmp.ne.s32.totalorder %s2076_s16, %s2072_s15  ;;  %p2571_p1 = scmp.eq.s32.totalorder %s2154_s19, 0 }
   0x8   : > { %p134_p3 = scmp.eq.s32.totalorder %s1542_s20, 1  ;;  %p1543_p5 = scmp.ge.s32.totalorder %s2084_s18, 1 }
   0x9   : > { %p2163_p4 = por %p2571_p1, %p41_p0  ;;  %p141_p7 = scmp.lt.s32.totalorder %s2084_s18, 3 }
   0xa   : > { %p2168_p6 = por %p134_p3, %p41_p0  ;;  %s2086_s24 = smov [#allocation5]  }
   0xb   : > { %s2574_s21 = scalar_select %p2163_p4, 1, 0 }
   0xc   : > { %s2575_s22 = scalar_select %p2168_p6, 1, 0 }
   0xd   : > { %p2173_p8 = pnand %p1543_p5, %p141_p7  ;;  %s153_s25 = sshll.u32 %s2086_s24, 4  ;;  %s2177_s25 = int_to_ptr.vmem [resolvable:$true] %s153_s25 }
   0xe   : > { %s2087_s27 = smov [#allocation7]   ;;  %s1928_s5 = scalar_lea.hbm %s2567_s1, 512 }
   0xf   : > { %p1781_p9 = pneg %p2173_p8  ;;  %s166_s28 = sshll.u32 %s2087_s27, 4  ;;  %s2188_s28 = int_to_ptr.vmem [resolvable:$true] %s166_s28 }
  0x10   : > { %p1929_p12 = scmp.ne.s32.totalorder %s2567_s1, %s1928_s5  ;;  %p1935_p5 = scmp.lt.u32.totalorder %s1928_s5, %s2567_s1 }
  0x11   : > { %p2184_p11 = pnand %p1781_p9, %p2571_p1 }
  0x13   : > { %p1930_p13 = pneg %p2184_p11 }
  0x15   : > { %p1931_p0 = pnand %p1930_p13, %p1929_p12 }
  0x17   : > { %p1932_p3 = pneg %p1931_p0 }
  0x19   : > { %p1937_p7 = pnand %p1935_p5, %p1932_p3 }
  0x1b   : > { %1940 = shalt.err (!%p1937_p7)
}
  0x1c   : > { %s1941_s10 = scalar_lea.vmem %s2177_s25, 512  ;;  %p1949_p2 = scmp.lt.s32.totalorder %s2177_s25, %s2177_s25 }
  0x1d   : > { %p1942_p9 = scmp.ne.s32.totalorder %s2177_s25, %s1941_s10  ;;  %p1950_p12 = scmp.lt.s32.totalorder %s1941_s10, %s1941_s10 }
  0x1f   : > { %p1944_p10 = pnand %p1942_p9, %p1930_p13  ;;  %p1951_p0 = por %p1950_p12, %p1949_p2 }
  0x21   : > { %p1945_p1 = pneg %p1944_p10 }
  0x23   : > { %p1952_p6 = pnand %p1951_p0, %p1945_p1 }
  0x25   : > { %1955 = shalt.err (!%p1952_p6)
}
  0x26   : > { %s2088_s11 = smov 128   ;;  %s2089_s12 = smov 8  }
  0x27   : > { %1784 = dma.hbm_to_vmem [thread:$0]  (!%p2184_p11), %s2567_s1, 512, %s2177_s25, [#allocation6], %s2088_s11, %s2088_s11, %s2089_s12  }
  0x28   : > { %s1956_s27 = scalar_lea.hbm %s2568_s2, 512 }
  0x29   : > { %p1957_p1 = scmp.ne.s32.totalorder %s2568_s2, %s1956_s27  ;;  %p1963_p10 = scmp.lt.u32.totalorder %s1956_s27, %s2568_s2 }
  0x2b   : > { %p1959_p2 = pnand %p1957_p1, %p1930_p13 }
  0x2d   : > { %p1960_p6 = pneg %p1959_p2 }
  0x2f   : > { %p1965_p3 = pnand %p1963_p10, %p1960_p6 }
  0x31   : > { %1968 = shalt.err (!%p1965_p3)
}
  0x32   : > { %s1969_s25 = scalar_lea.vmem %s2188_s28, 512  ;;  %p1977_p12 = scmp.lt.s32.totalorder %s2188_s28, %s2188_s28 }
  0x33   : > { %p1970_p5 = scmp.ne.s32.totalorder %s2188_s28, %s1969_s25  ;;  %p1978_p0 = scmp.lt.s32.totalorder %s1969_s25, %s1969_s25 }
  0x35   : > { %p1972_p7 = pnand %p1970_p5, %p1930_p13  ;;  %p1979_p1 = por %p1978_p0, %p1977_p12 }
  0x37   : > { %p1973_p9 = pneg %p1972_p7 }
  0x39   : > { %p1980_p2 = pnand %p1979_p1, %p1973_p9 }
  0x3b   : > { %1983 = shalt.err (!%p1980_p2)
}
  0x3c   : > { %1787 = dma.hbm_to_vmem [thread:$0]  (!%p2184_p11), %s2568_s2, 512, %s2188_s28, [#allocation6], %s2088_s11, %s2088_s11, %s2089_s12  }
  0x3d   : > { %s2249_s26 = sadd.s32 1, %s2084_s18   ;;  %s28_s9 = sadd.s32 1, %s2080_s17 }
  0x3e   : > { %s25_s10 = ssub.s32 %s2084_s18, %s2249_s26  ;;  %p35_p13 = scmp.ne.s32.totalorder %s2080_s17, %s2076_s16 }
  0x3f   : > { %p26_p6 = scmp.eq.s32.totalorder %s25_s10, 0  ;;  %p36_p10 = scmp.eq.s32.totalorder %s2084_s18, 0 }
  0x40   : > { %p2578_p3 = scmp.eq.s32.totalorder %s2154_s19, 1  ;;  %p1798_p7 = scmp.lt.s32.totalorder %s2084_s18, 2 }
  0x41   : > { %s2265_s14 = scalar_select %p26_p6, %s2080_s17, %s28_s9  }
  0x42   : > { %p2259_p5 = por %p2578_p3, %p35_p13  ;;  %p37_p9 = por %p36_p10, %p35_p13 }
  0x43   : > { %s183_s20 = sand.u32 1, %s2080_s17   ;;  %s1589_s28 = sshll.u32 %s2084_s18, 8 }
  0x44   : > { %s2579_s13 = scalar_select %p2259_p5, 1, 0 }
  0x45   : > { %s1547_s24 = sshll.u32 %s183_s20, 4  ;;  %s2272_s30 = scalar_lea.hbm %s2566_s0, %s1589_s28 }
  0x46   : > { %s187_s5 = scalar_lea.vmem [#allocation2], %s1547_s24  ;;  %p2276_p11 = pnand %p1798_p7, %p37_p9 }
  0x47   : > { %s194_s6 = sshll.u32 %s187_s5, 4  ;;  %s2280_s7 = scalar_lea.sflag [#allocation3], %s183_s20  ;;  %s2274_s6 = int_to_ptr.vmem [resolvable:$true] %s194_s6 }
  0x48   : > { %s1984_s8 = scalar_lea.hbm %s2272_s30, 256  ;;  %p1986_p0 = pneg %p2276_p11 }
  0x49   : > { %p1985_p12 = scmp.ne.s32.totalorder %s2272_s30, %s1984_s8  ;;  %s1989_s24 = scalar_lea.hbm %s2566_s0, 512 }
  0x4a   : > { %p1990_p13 = scmp.lt.u32.totalorder %s2272_s30, %s2566_s0  ;;  %p1991_p6 = scmp.lt.u32.totalorder %s1989_s24, %s1984_s8 }
  0x4b   : > { %p1987_p1 = pnand %p1986_p0, %p1985_p12  ;;  %p1993_p3 = scmp.lt.u32.totalorder %s1984_s8, %s2272_s30 }
  0x4c   : > { %p1992_p10 = por %p1991_p6, %p1990_p13 }
  0x4d   : > { %p1988_p2 = pneg %p1987_p1 }
  0x4e   : > { %p1994_p7 = por %p1993_p3, %p1992_p10 }
  0x50   : > { %p1995_p9 = pnand %p1994_p7, %p1988_p2 }
  0x52   : > { %1998 = shalt.err (!%p1995_p9)
}
  0x53   : > { %s1999_s20 = scalar_lea.vmem %s2274_s6, 256  ;;  %s2090_s29 = smov [#allocation2]  }
  0x54   : > { %p2000_p12 = scmp.ne.s32.totalorder %s2274_s6, %s1999_s20  ;;  %s2004_s5 = sshll.u32 %s2090_s29, 4  ;;  %s2005_s5 = int_to_ptr.vmem [resolvable:$false] %s2004_s5 }
  0x55   : > { %s2006_s9 = scalar_lea.vmem %s2005_s5, 512  ;;  %p2007_p4 = scmp.lt.s32.totalorder %s2274_s6, %s2005_s5 }
  0x56   : > { %p2002_p1 = pnand %p2000_p12, %p1986_p0  ;;  %p2008_p13 = scmp.lt.s32.totalorder %s2006_s9, %s1999_s20 }
  0x58   : > { %p2003_p5 = pneg %p2002_p1  ;;  %p2009_p6 = por %p2008_p13, %p2007_p4 }
  0x5a   : > { %p2010_p10 = pnand %p2009_p6, %p2003_p5 }
  0x5c   : > { %2013 = shalt.err (!%p2010_p10)
}
  0x5d   : > { %1791 = dma.hbm_to_vmem [thread:$0]  (!%p2276_p11), %s2272_s30, 256, %s2274_s6, %s2280_s7, %s2088_s11, %s2088_s11, %s2089_s12  }
  0x5e   : > { %206 = sbr.rel (%p2173_p8) target bundleno = 2258 (0x8d2), region = 36  ;;  %s2314_s8 = sand.u32 (!%p2173_p8), 1, %s2076_s16  }
  0x5f   : > { %s1551_s10 = sshll.u32 (!%p2173_p8), %s2314_s8, 4  ;;  %s209_s24 = scalar_lea.sflag (!%p2173_p8), [#allocation3], %s2314_s8 }
  0x60   : > { %s212_s25 = scalar_lea.vmem (!%p2173_p8), [#allocation2], %s1551_s10  ;;  %p2581_p4 = scmp.ne.s32.totalorder (!%p2173_p8), %s2574_s21, 0 }
  0x65   : > { %2059 = dma.done.wait (%p2581_p4), %s209_s24, 256  }
  0x66   : > { %2061 = vsyncadd (%p2581_p4), %s209_s24, 4294967040  ;;  %p2582_p5 = scmp.eq.s32.totalorder %s2154_s19, 0 }
  0x68   : > { %2063 = dma.done.wait (%p2582_p5), [#allocation6], 1024   ;;  %p2583_p8 = pmov %p2582_p5 }
  0x69   : > { %vm251_vm0 = vcmask 261120   ;;  %v247_v0 = vld [vmem:[#allocation5] sm:$0xff]  ;;  %v248_v1 = vld [vmem:[#allocation5 + $0x8] sm:$0xff]  ;;  %v249_v2 = vld [vmem:[#allocation5 + $0x10] sm:$0xff]  ;;  %vm335_vm1 = vcmask 64512   ;;  %s2091_s21 = smov 96  }
  0x6a   : > { %2065 = vsyncadd (%p2583_p8), [#allocation6], 4294966272  ;;  %v1713_v3 = vpack.c.bf16 %v248_v1, %v247_v0  ;;  %v250_v4 = vld [vmem:[#allocation5 + $0x18] sm:$0xff]  ;;  %v245_v5 = vld [vmem:[%s212_s25] sm:$0xff]  ;;  %s2092_s23 = smov 120   ;;  %s2093_s11 = smov 88  }
  0x6b   : > { %v1717_v6 = vpack.c.bf16 %v250_v4, %v249_v2  ;;  %1643 = vmatprep.mubr.msk.f32.mxu0 %vm251_vm0, %v245_v5  ;;  %v246_v7 = vld [vmem:[%s212_s25 + $0x8] sm:$0xff]  ;;  %vm377_vm2 = vcmask 80896   ;;  %vm362_vm3 = vcmask 72704   ;;  %s2094_s12 = smov 64   ;;  %s2095_s30 = smov 112   ;;  %vm479_vm5 = vcmask 130048  }
  0x6c   : > { %1714 = vmatprep.subr.bf16.mxu0 %v1713_v3  ;;  %vm2365_vm4 = vmpackc.low %vm377_vm2, %vm377_vm2  ;;  %s2096_s6 = smov 80   ;;  %s2097_s7 = smov 56   ;;  %vm1339_vm6 = vcmask 195584  }
  0x6d   : > { %1716 = vmatpush3.bf16.msra.mxu0 %v1713_v3  ;;  %s2098_s28 = smov 72   ;;  %s2099_s27 = smov 104  }
  0x6e   : > { %1718 = vmatprep.subr.bf16.mxu0 %v1717_v6  ;;  %s2100_s20 = smov 48   ;;  %s2101_s29 = smov 40  }
  0x6f   : > { %s2103_s5 = smov 8   ;;  %s2104_s9 = smov 16  }
  0x70   : > { %s2105_s24 = smov 24   ;;  %p2586_p0 = scmp.ne.s32.totalorder %s2579_s13, 0 }
  0x71   : > { %1720 = vmatpush3.bf16.msra.mxu0 %v1717_v6 }
  0x74   : > { %1644 = vmatmul.mubr.msk.f32.vlgmr.msra.gmra.mrb[0].mxu0 %vm251_vm0, %v246_v7 }
 0x147   : > { %v1645_v8 = vpop.f32.mrb[0].mxu0 }
 0x148   : > { %v2330_v9 = vmul.f32 %v1645_v8, %v1645_v8  ;;  %v324_v10 = vpop.f32.mrb[1].mxu0  ;;  %v2375_v41 = vmul.f32 0.35355338, %v1645_v8 }
 0x149   : > { %v2332_v11 = vmul.f32 %v324_v10, %v324_v10  ;;  %v2334_v12 = vpack.i.bf16 %v1645_v8, %v324_v10  ;;  %v2353_v21 = vmul.f32 0.35355338, %v324_v10 }
 0x14a   : > { %v339_v13 = vsel %vm335_vm1, %v2330_v9, 0.0 }
 0x14b   : > { %340 = vadd.xlane.f32.xlu1 %v339_v13  ;;  %344 = vrot.lane.b32.xlu0 %v2332_v11, %s2091_s21  ;;  %v336_v14 = vsel %vm335_vm1, %v2332_v11, 0.0 }
 0x14f   : > { %346 = vrot.lane.b32.xlu0 %v2330_v9, %s2091_s21 }
 0x16e   : > { %337 = vadd.xlane.f32.xlu0 %v336_v14 }
 0x184   : > { %579 = vrot.lane.b32.xlu0 %v2330_v9, %s2092_s23 }
 0x1bd   : > { %v345_v15 = vpop.permute.xlu0 %344 }
 0x1be   : > { %v350_v18 = vsel %vm335_vm1, %v345_v15, 0.0 }
 0x1c1   : > { %v347_v16 = vpop.permute.xlu0 %346 }
 0x1c2   : > { %v353_v17 = vsel %vm335_vm1, %v347_v16, 0.0 }
 0x1c3   : > { %354 = vadd.xlane.f32.xlu1 %v353_v17 }
 0x1c7   : > { %351 = vadd.xlane.f32.xlu1 %v350_v18 }
 0x1d8   : > { %1855 = vrot.lane.b32.xlu1 %v2334_v12, %s2091_s21  ;;  %v341_v24 = vpop.xlane.xlu1 %340 }
 0x1d9   : > { %v359_v38 = vmul.f32 -0.17677669, %v341_v24 }
 0x1db   : > { %v361_v42 = vsel %vm335_vm1, %v2375_v41, %v359_v38 }
 0x1dc   : > { %589 = vrot.lane.b32.xlu1 %v2332_v11, %s2093_s11  ;;  %v364_v43 = vsel %vm362_vm3, %v361_v42, -0.17677669 }
 0x1e0   : > { %591 = vrot.lane.b32.xlu1 %v2330_v9, %s2093_s11 }
 0x1e4   : > { %577 = vrot.lane.b32.xlu1 %v2332_v11, %s2092_s23 }
 0x1fb   : > { %v338_v19 = vpop.xlane.xlu0 %337 }
 0x1fc   : > { %v358_v20 = vmul.f32 -0.17677669, %v338_v19 }
 0x1fe   : > { %v360_v22 = vsel %vm335_vm1, %v2353_v21, %v358_v20 }
 0x1ff   : > { %v363_v23 = vsel %vm362_vm3, %v360_v22, -0.17677669  ;;  %v580_v44 = vpop.permute.xlu0 %579 }
 0x200   : > { %1650 = vmatprep.mubr.msk.f32.mxu1 %vm377_vm2, %v363_v23  ;;  %v586_v45 = vsel %vm335_vm1, %v580_v44, 0.0 }
 0x250   : > { %v355_v25 = vpop.xlane.xlu1 %354 }
 0x254   : > { %v352_v26 = vpop.xlane.xlu1 %351 }
 0x258   : > { %v1856_v27 = vpop.permute.xlu1 %1855 }
 0x259   : > { %v1858_v28 = vunpack.i.h.bf16 %v1856_v27  ;;  %v1857_v29 = vunpack.i.l.bf16 %v1856_v27 }
 0x25b   : > { %v374_v30 = vsel %vm335_vm1, %v1858_v28, 1.0  ;;  %v373_v31 = vsel %vm335_vm1, %v1857_v29, 1.0 }
 0x25c   : > { %v590_v32 = vpop.permute.xlu1 %589  ;;  %v375_v33 = vsel %vm362_vm3, %v373_v31, %v352_v26  ;;  %v376_v34 = vsel %vm362_vm3, %v374_v30, %v355_v25 }
 0x25d   : > { %v595_v36 = vsel %vm335_vm1, %v590_v32, 0.0  ;;  %v1721_v37 = vpack.c.bf16 %v376_v34, %v375_v33 }
 0x25e   : > { %596 = vadd.xlane.f32.xlu1 %v595_v36 }
 0x25f   : > { %1723 = vmatprep.subr.msk.bf16.mxu1 %vm2365_vm4, %v1721_v37 }
 0x260   : > { %v592_v39 = vpop.permute.xlu1 %591  ;;  %1726 = vmatpush3.bf16.xpose.msk.msra.mxu1 %vm2365_vm4, %v1721_v37 }
 0x261   : > { %v598_v40 = vsel %vm335_vm1, %v592_v39, 0.0 }
 0x262   : > { %599 = vadd.xlane.f32.xlu0 %v598_v40 }
 0x264   : > { %v578_v46 = vpop.permute.xlu1 %577 }
 0x265   : > { %v583_v47 = vsel %vm335_vm1, %v578_v46, 0.0 }
 0x267   : > { %1651 = vmatmul.mubr.msk.f32.vlgmr.msra.gmra.mrb[0].mxu1 %vm377_vm2, %v364_v43 }
 0x26f   : > { %1860 = vrot.lane.b32.xlu1 %v2334_v12, %s2094_s12  ;;  %s1590_s12 = sshll.u32 %s2154_s19, 8 }
 0x278   : > { %1865 = vrot.lane.b32.xlu0 %v2334_v12, %s2093_s11 }
 0x27c   : > { %605 = vrot.lane.b32.xlu0 %v2353_v21, %s2092_s23 }
 0x293   : > { %587 = vadd.xlane.f32.xlu1 %v586_v45 }
 0x29b   : > { %584 = vadd.xlane.f32.xlu0 %v583_v47 }
 0x2a4   : > { %823 = vrot.lane.b32.xlu1 %v2332_v11, %s2095_s30 }
 0x2b1   : > { %607 = vrot.lane.b32.xlu0 %v2375_v41, %s2092_s23  ;;  %s244_s23 = scalar_lea.vmem [#allocation8], %s1551_s10  ;;  %s1437_s10 = scalar_lea.sflag [#allocation4], %s2314_s8 }
 0x2b2   : > { %s1450_s11 = sshll.u32 %s244_s23, 4  ;;  %s2514_s11 = int_to_ptr.vmem [resolvable:$true] %s1450_s11 }
 0x2b3   : > { %s2014_s19 = scalar_lea.vmem %s2514_s11, 256 }
 0x2b4   : > { %p2015_p11 = scmp.ne.s32.totalorder %s2514_s11, %s2014_s19 }
 0x2b5   : > { %835 = vrot.lane.b32.xlu0 %v2332_v11, %s2096_s6 }
 0x2b6   : > { %p2016_p2 = pnand %p2015_p11, %p2586_p0 }
 0x2b8   : > { %p2017_p3 = pneg %p2016_p2 }
 0x2b9   : > { %837 = vrot.lane.b32.xlu0 %v2330_v9, %s2096_s6 }
 0x2bd   : > { %825 = vrot.lane.b32.xlu0 %v2330_v9, %s2095_s30 }
 0x2c1   : > { %1870 = vrot.lane.b32.xlu0 %v2334_v12, %s2097_s7  ;;  %s2519_s7 = scalar_lea.hbm %s2570_s4, %s1590_s12 }
 0x2c5   : > { %1875 = vrot.lane.b32.xlu0 %v2334_v12, %s2096_s6 }
 0x2eb   : > { %v597_v48 = vpop.xlane.xlu1 %596 }
 0x2ef   : > { %v1861_v49 = vpop.permute.xlu1 %1860  ;;  %v600_v50 = vpop.xlane.xlu0 %599 }
 0x2f0   : > { %v1863_v51 = vunpack.i.h.bf16 %v1861_v49  ;;  %v1862_v52 = vunpack.i.l.bf16 %v1861_v49 }
 0x2f2   : > { %v478_v53 = vsel %vm335_vm1, %v1863_v51, 1.0  ;;  %v477_v54 = vsel %vm335_vm1, %v1862_v52, 1.0 }
 0x2f3   : > { %v1866_v55 = vpop.permute.xlu0 %1865  ;;  %v1727_v56 = vpack.c.bf16 %v478_v53, %v477_v54 }
 0x2f4   : > { %v1868_v57 = vunpack.i.h.bf16 %v1866_v55  ;;  %v1867_v58 = vunpack.i.l.bf16 %v1866_v55 }
 0x2f5   : > { %1728 = vmatprep.subr.bf16.mxu1 %v1727_v56 }
 0x2f6   : > { %v622_v59 = vsel %vm335_vm1, %v1868_v57, 1.0  ;;  %v621_v60 = vsel %vm335_vm1, %v1867_v58, 1.0  ;;  %1730 = vmatpush3.bf16.msra.mxu1 %v1727_v56 }
 0x2f7   : > { %v624_v61 = vsel %vm362_vm3, %v622_v59, %v600_v50  ;;  %v623_v62 = vsel %vm362_vm3, %v621_v60, %v597_v48  ;;  %v606_v0 = vpop.permute.xlu0 %605 }
 0x2f8   : > { %v1731_v63 = vpack.c.bf16 %v624_v61, %v623_v62 }
 0x2fa   : > { %1733 = vmatprep.subr.msk.bf16.mxu1 %vm2365_vm4, %v1731_v63 }
 0x320   : > { %v588_v5 = vpop.xlane.xlu1 %587 }
 0x321   : > { %v602_v33 = vmul.f32 -0.17677669, %v588_v5 }
 0x324   : > { %v824_v13 = vpop.permute.xlu1 %823 }
 0x325   : > { %v829_v23 = vsel %vm335_vm1, %v824_v13, 0.0 }
 0x328   : > { %v585_v1 = vpop.xlane.xlu0 %584 }
 0x329   : > { %v601_v28 = vmul.f32 -0.17677669, %v585_v1 }
 0x32b   : > { %v611_v29 = vsel %vm335_vm1, %v606_v0, %v601_v28 }
 0x32c   : > { %v608_v2 = vpop.permute.xlu0 %607  ;;  %v613_v32 = vsel %vm362_vm3, %v611_v29, -0.17677669 }
 0x32d   : > { %v612_v34 = vsel %vm335_vm1, %v608_v2, %v602_v33 }
 0x32e   : > { %v614_v36 = vsel %vm362_vm3, %v612_v34, -0.17677669 }
 0x330   : > { %v836_v3 = vpop.permute.xlu0 %835 }
 0x331   : > { %v841_v4 = vsel %vm335_vm1, %v836_v3, 0.0 }
 0x332   : > { %842 = vadd.xlane.f32.xlu0 %v841_v4 }
 0x334   : > { %v838_v6 = vpop.permute.xlu0 %837 }
 0x335   : > { %v844_v7 = vsel %vm335_vm1, %v838_v6, 0.0 }
 0x336   : > { %845 = vadd.xlane.f32.xlu1 %v844_v7 }
 0x338   : > { %v826_v8 = vpop.permute.xlu0 %825 }
 0x339   : > { %v832_v10 = vsel %vm335_vm1, %v826_v8, 0.0 }
 0x33a   : > { %v1652_v14 = vpop.f32.mrb[0].mxu1  ;;  %833 = vadd.xlane.f32.xlu1 %v832_v10 }
 0x33b   : > { %v466_v15 = vmin.f32 %v1652_v14, 0.0  ;;  %v456_v16 = vpop.f32.mrb[1].mxu1 }
 0x33c   : > { %v465_v17 = vmin.f32 %v456_v16, 0.0  ;;  %v1871_v18 = vpop.permute.xlu0 %1870 }
 0x33d   : > { %v469_v19 = vmul.f32 1.442695, %v466_v15  ;;  %v1873_v20 = vunpack.i.h.bf16 %v1871_v18  ;;  %v1872_v22 = vunpack.i.l.bf16 %v1871_v18 }
 0x33e   : > { %v467_v24 = vmul.f32 1.442695, %v465_v17  ;;  %830 = vadd.xlane.f32.xlu1 %v829_v23 }
 0x33f   : > { %v725_v25 = vsel %vm335_vm1, %v1873_v20, 1.0  ;;  %v724_v26 = vsel %vm335_vm1, %v1872_v22, 1.0 }
 0x340   : > { %1896 = vpow2.f32 %v467_v24  ;;  %v1737_v27 = vpack.c.bf16 %v725_v25, %v724_v26  ;;  %v1876_v37 = vpop.permute.xlu0 %1875 }
 0x341   : > { %1898 = vpow2.f32 %v469_v19  ;;  %v1878_v38 = vunpack.i.h.bf16 %v1876_v37  ;;  %v1877_v39 = vunpack.i.l.bf16 %v1876_v37 }
 0x342   : > { %1738 = vmatprep.subr.bf16.mxu0 %v1737_v27 }
 0x343   : > { %1740 = vmatpush3.bf16.msra.mxu0 %v1737_v27  ;;  %v866_v42 = vsel %vm335_vm1, %v1878_v38, 1.0  ;;  %v865_v43 = vsel %vm335_vm1, %v1877_v39, 1.0 }
 0x348   : > { %851 = vrot.lane.b32.xlu0 %v2375_v41, %s2095_s30 }
 0x34a   : > { %v1897_v30 = vpop.eup %1896 }
 0x34b   : > { %v1899_v31 = vpop.eup %1898  ;;  %1657 = vmatprep.mubr.msk.f32.mxu1 %vm479_vm5, %v1897_v30 }
 0x34c   : > { %1658 = vmatmul.mubr.msk.f32.vlgmr.msra.gmra.mrb[2].mxu1 %vm479_vm5, %v1899_v31  ;;  %1079 = vrot.lane.b32.xlu0 %v2332_v11, %s2098_s28 }
 0x34d   : > { %1736 = vmatpush3.bf16.xpose.msk.msra.mxu1 %vm2365_vm4, %v1731_v63  ;;  %1664 = vmatprep.mubr.msk.f32.mxu1 %vm377_vm2, %v613_v32 }
 0x34f   : > { %849 = vrot.lane.b32.xlu1 %v2353_v21, %s2095_s30 }
 0x350   : > { %1081 = vrot.lane.b32.xlu0 %v2330_v9, %s2098_s28 }
 0x353   : > { %1069 = vrot.lane.b32.xlu1 %v2330_v9, %s2099_s27 }
 0x354   : > { %1665 = vmatmul.mubr.msk.f32.vlgmr.msra.gmra.mrb[4].mxu1 %vm377_vm2, %v614_v36  ;;  %1067 = vrot.lane.b32.xlu0 %v2332_v11, %s2099_s27 }
 0x358   : > { %1880 = vrot.lane.b32.xlu0 %v2334_v12, %s2100_s20 }
 0x3bf   : > { %v843_v40 = vpop.xlane.xlu0 %842 }
 0x3c0   : > { %v867_v9 = vsel %vm362_vm3, %v865_v43, %v843_v40  ;;  %v2102_v43 = vmov 8  }
 0x3c1   : > { %1894 = vset.pattern.permute.xlu0 %v2102_v43  ;;  %1895 = vset.pattern.permute.xlu1 %v2102_v43 }
 0x3c3   : > { %v846_v44 = vpop.xlane.xlu1 %845  ;;  %v852_v45 = vpop.permute.xlu0 %851 }
 0x3c4   : > { %v868_v46 = vsel %vm362_vm3, %v866_v42, %v846_v44 }
 0x3c5   : > { %v1741_v47 = vpack.c.bf16 %v868_v46, %v867_v9 }
 0x3c7   : > { %v834_v48 = vpop.xlane.xlu1 %833  ;;  %v1080_v11 = vpop.permute.xlu0 %1079  ;;  %1743 = vmatprep.subr.msk.bf16.mxu0 %vm2365_vm4, %v1741_v47 }
 0x3c8   : > { %v848_v49 = vmul.f32 -0.17677669, %v834_v48  ;;  %v1085_v50 = vsel %vm335_vm1, %v1080_v11, 0.0 }
 0x3c9   : > { %1086 = vadd.xlane.f32.xlu0 %v1085_v50 }
 0x3ca   : > { %v856_v51 = vsel %vm335_vm1, %v852_v45, %v848_v49 }
 0x3cb   : > { %v831_v52 = vpop.xlane.xlu1 %830  ;;  %v1082_v53 = vpop.permute.xlu0 %1081 }
 0x3cc   : > { %v1088_v54 = vsel %vm335_vm1, %v1082_v53, 0.0  ;;  %v847_v55 = vmul.f32 -0.17677669, %v831_v52 }
 0x3cd   : > { %1089 = vadd.xlane.f32.xlu1 %v1088_v54 }
 0x3cf   : > { %v850_v56 = vpop.permute.xlu1 %849  ;;  %v1068_v57 = vpop.permute.xlu0 %1067 }
 0x3d0   : > { %v855_v58 = vsel %vm335_vm1, %v850_v56, %v847_v55  ;;  %v1073_v3 = vsel %vm335_vm1, %v1068_v57, 0.0 }
 0x3d1   : > { %v857_v15 = vsel %vm362_vm3, %v855_v58, -0.17677669 }
 0x3d3   : > { %v1070_v59 = vpop.permute.xlu1 %1069  ;;  %v1881_v60 = vpop.permute.xlu0 %1880 }
 0x3d4   : > { %v1883_v61 = vunpack.i.h.bf16 %v1881_v60  ;;  %v1882_v62 = vunpack.i.l.bf16 %v1881_v60  ;;  %v1076_v63 = vsel %vm335_vm1, %v1070_v59, 0.0 }
 0x3d5   : > { %1077 = vadd.xlane.f32.xlu1 %v1076_v63 }
 0x3d6   : > { %v969_v0 = vsel %vm335_vm1, %v1883_v61, 1.0  ;;  %v968_v1 = vsel %vm335_vm1, %v1882_v62, 1.0 }
 0x3d7   : > { %v1747_v2 = vpack.c.bf16 %v969_v0, %v968_v1 }
 0x3d9   : > { %1074 = vadd.xlane.f32.xlu1 %v1073_v3  ;;  %1748 = vmatprep.subr.bf16.mxu1 %v1747_v2 }
 0x3da   : > { %1750 = vmatpush3.bf16.msra.mxu1 %v1747_v2 }
 0x3df   : > { %1093 = vrot.lane.b32.xlu0 %v2353_v21, %s2099_s27 }
 0x3e3   : > { %1095 = vrot.lane.b32.xlu0 %v2375_v41, %s2099_s27 }
 0x3e7   : > { %1890 = vrot.lane.b32.xlu0 %v2334_v12, %s2101_s29 }
 0x3ea   : > { %1885 = vrot.lane.b32.xlu1 %v2334_v12, %s2098_s28  ;;  %v858_v12 = vsel %vm362_vm3, %v856_v51, -0.17677669  ;;  %s2106_s28 = smov [#allocation8]  }
 0x3eb   : > { %s2018_s27 = sshll.u32 %s2106_s28, 4  ;;  %s2019_s27 = int_to_ptr.vmem [resolvable:$false] %s2018_s27 }
 0x3ec   : > { %s2020_s20 = scalar_lea.vmem %s2019_s27, 512  ;;  %p2021_p7 = scmp.lt.s32.totalorder %s2514_s11, %s2019_s27 }
 0x3ed   : > { %p2022_p9 = scmp.lt.s32.totalorder %s2020_s20, %s2014_s19 }
 0x3ef   : > { %p2023_p12 = por %p2022_p9, %p2021_p7 }
 0x3f1   : > { %p2024_p1 = pnand %p2023_p12, %p2017_p3 }
 0x41f   : > { %v2456_v4 = vpop.f32.mrb[2].mxu1 }
 0x420   : > { %v2458_v5 = vpop.f32.mrb[3].mxu1 }
 0x427   : > { %v1666_v6 = vpop.f32.mrb[4].mxu1 }
 0x428   : > { %v713_v7 = vmin.f32 %v1666_v6, 0.0  ;;  %v703_v8 = vpop.f32.mrb[5].mxu1 }
 0x429   : > { %v712_v10 = vmin.f32 %v703_v8, 0.0 }
 0x42a   : > { %v716_v13 = vmul.f32 1.442695, %v713_v7 }
 0x42b   : > { %v714_v14 = vmul.f32 1.442695, %v712_v10 }
 0x42d   : > { %1900 = vpow2.f32 %v714_v14 }
 0x42e   : > { %1902 = vpow2.f32 %v716_v13 }
 0x437   : > { %v1901_v21 = vpop.eup %1900 }
 0x438   : > { %v1903_v41 = vpop.eup %1902  ;;  %1671 = vmatprep.mubr.msk.f32.mxu0 %vm479_vm5, %v1901_v21 }
 0x439   : > { %1672 = vmatmul.mubr.msk.f32.vlgmr.msra.gmra.mrb[2].mxu0 %vm479_vm5, %v1903_v41  ;;  %v562_v41 = vadd.f32 1e-06, %v2456_v4 }
 0x43a   : > { %1746 = vmatpush3.bf16.xpose.msk.msra.mxu0 %vm2365_vm4, %v1741_v47  ;;  %1678 = vmatprep.mubr.msk.f32.mxu0 %vm377_vm2, %v857_v15  ;;  %v561_v15 = vadd.f32 1e-06, %v2458_v5 }
 0x441   : > { %1679 = vmatmul.mubr.msk.f32.vlgmr.msra.gmra.mrb[4].mxu0 %vm377_vm2, %v858_v12 }
 0x456   : > { %v1087_v16 = vpop.xlane.xlu0 %1086 }
 0x45a   : > { %v1094_v17 = vpop.permute.xlu0 %1093  ;;  %v1090_v18 = vpop.xlane.xlu1 %1089 }
 0x45e   : > { %v1096_v19 = vpop.permute.xlu0 %1095 }
 0x462   : > { %v1078_v20 = vpop.xlane.xlu1 %1077  ;;  %v1891_v22 = vpop.permute.xlu0 %1890 }
 0x463   : > { %v1092_v23 = vmul.f32 -0.17677669, %v1078_v20  ;;  %v1893_v24 = vunpack.i.h.bf16 %v1891_v22  ;;  %v1892_v25 = vunpack.i.l.bf16 %v1891_v22 }
 0x465   : > { %v1100_v26 = vsel %vm335_vm1, %v1096_v19, %v1092_v23  ;;  %v1213_v27 = vsel %vm335_vm1, %v1893_v24, 1.0  ;;  %v1212_v28 = vsel %vm335_vm1, %v1892_v25, 1.0 }
 0x466   : > { %v1075_v29 = vpop.xlane.xlu1 %1074  ;;  %v1757_v30 = vpack.c.bf16 %v1213_v27, %v1212_v28  ;;  %v1102_v57 = vsel %vm362_vm3, %v1100_v26, -0.17677669  ;;  %v1342_v28 = vld [vmem:[#allocation7] sm:$0xff] }
 0x467   : > { %v1091_v31 = vmul.f32 -0.17677669, %v1075_v29  ;;  %v1343_v29 = vld [vmem:[#allocation7 + $0x8] sm:$0xff] }
 0x468   : > { %1758 = vmatprep.subr.bf16.mxu0 %v1757_v30 }
 0x469   : > { %1760 = vmatpush3.bf16.msra.mxu0 %v1757_v30  ;;  %v1099_v32 = vsel %vm335_vm1, %v1094_v17, %v1091_v31  ;;  %v1344_v30 = vld [vmem:[#allocation7 + $0x10] sm:$0xff]  ;;  %v1761_v31 = vpack.c.bf16 %v1343_v29, %v1342_v28 }
 0x46a   : > { %v1886_v33 = vpop.permute.xlu1 %1885  ;;  %v1101_v56 = vsel %vm362_vm3, %v1099_v32, -0.17677669  ;;  %v1345_v32 = vld [vmem:[#allocation7 + $0x18] sm:$0xff] }
 0x46b   : > { %v1888_v34 = vunpack.i.h.bf16 %v1886_v33  ;;  %v1887_v36 = vunpack.i.l.bf16 %v1886_v33  ;;  %v1765_v33 = vpack.c.bf16 %v1345_v32, %v1344_v30  ;;  %1762 = vmatprep.subr.bf16.mxu0 %v1761_v31 }
 0x46d   : > { %v1110_v37 = vsel %vm335_vm1, %v1888_v34, 1.0  ;;  %v1109_v38 = vsel %vm335_vm1, %v1887_v36, 1.0 }
 0x46e   : > { %v1112_v39 = vsel %vm362_vm3, %v1110_v37, %v1090_v18  ;;  %v1111_v40 = vsel %vm362_vm3, %v1109_v38, %v1087_v16 }
 0x46f   : > { %v1751_v42 = vpack.c.bf16 %v1112_v39, %v1111_v40 }
 0x471   : > { %1753 = vmatprep.subr.msk.bf16.mxu1 %vm2365_vm4, %v1751_v42 }
 0x50c   : > { %v2478_v44 = vpop.f32.mrb[2].mxu0 }
 0x50d   : > { %v808_v45 = vadd.f32 1e-06, %v2478_v44  ;;  %v2481_v9 = vpop.f32.mrb[3].mxu0 }
 0x50e   : > { %v807_v46 = vadd.f32 1e-06, %v2481_v9 }
 0x50f   : > { %1904 = vrcp.f32 %v808_v45 }
 0x510   : > { %1906 = vrcp.f32 %v807_v46 }
 0x514   : > { %v1680_v47 = vpop.f32.mrb[4].mxu0 }
 0x515   : > { %v957_v48 = vmin.f32 %v1680_v47, 0.0  ;;  %v947_v11 = vpop.f32.mrb[5].mxu0 }
 0x516   : > { %v956_v49 = vmin.f32 %v947_v11, 0.0 }
 0x517   : > { %v960_v50 = vmul.f32 1.442695, %v957_v48 }
 0x518   : > { %v958_v51 = vmul.f32 1.442695, %v956_v49 }
 0x519   : > { %v1905_v52 = vpop.eup %1904 }
 0x51a   : > { %v1907_v53 = vpop.eup %1906  ;;  %1908 = vpow2.f32 %v958_v51  ;;  %818 = vperm.xlu0 %1894, %v1905_v52  }
 0x51b   : > { %1910 = vpow2.f32 %v960_v50  ;;  %813 = vperm.xlu1 %1895, %v1907_v53  }
 0x524   : > { %v1909_v54 = vpop.eup %1908 }
 0x525   : > { %v1911_v55 = vpop.eup %1910  ;;  %1685 = vmatprep.mubr.msk.f32.mxu1 %vm479_vm5, %v1909_v54 }
 0x526   : > { %1686 = vmatmul.mubr.msk.f32.vlgmr.msra.gmra.mrb[6].mxu1 %vm479_vm5, %v1911_v55 }
 0x527   : > { %1756 = vmatpush3.bf16.xpose.msk.msra.mxu1 %vm2365_vm4, %v1751_v42  ;;  %1692 = vmatprep.mubr.msk.f32.mxu1 %vm377_vm2, %v1101_v56 }
 0x52e   : > { %1693 = vmatmul.mubr.msk.f32.vlgmr.msra.gmra.mrb[8].mxu1 %vm377_vm2, %v1102_v57 }
 0x599   : > { %v819_v20 = vpop.permute.xlu0 %818 }
 0x59a   : > { %v814_v12 = vpop.permute.xlu1 %813  ;;  %v822_v23 = vmul.f32 %v2478_v44, %v819_v20 }
 0x59b   : > { %v821_v24 = vmul.f32 %v814_v12, %v2481_v9 }
 0x5f9   : > { %v1687_v58 = vpop.f32.mrb[6].mxu1 }
 0x5fa   : > { %v1052_v59 = vadd.f32 1e-06, %v1687_v58  ;;  %v1042_v60 = vpop.f32.mrb[7].mxu1 }
 0x5fb   : > { %v1051_v61 = vadd.f32 1e-06, %v1042_v60 }
 0x5fc   : > { %1912 = vrcp.f32 %v1052_v59 }
 0x5fd   : > { %1914 = vrcp.f32 %v1051_v61 }
 0x601   : > { %v1694_v62 = vpop.f32.mrb[8].mxu1 }
 0x602   : > { %v1201_v63 = vmin.f32 %v1694_v62, 0.0  ;;  %v1191_v0 = vpop.f32.mrb[9].mxu1 }
 0x603   : > { %v1200_v1 = vmin.f32 %v1191_v0, 0.0 }
 0x604   : > { %v1204_v2 = vmul.f32 1.442695, %v1201_v63 }
 0x605   : > { %v1202_v3 = vmul.f32 1.442695, %v1200_v1 }
 0x606   : > { %v1913_v35 = vpop.eup %1912 }
 0x607   : > { %1916 = vpow2.f32 %v1202_v3  ;;  %1062 = vperm.xlu1 %1895, %v1913_v35   ;;  %v1915_v6 = vpop.eup %1914 }
 0x608   : > { %1918 = vpow2.f32 %v1204_v2 }
 0x60b   : > { %1057 = vperm.xlu1 %1895, %v1915_v6  }
 0x611   : > { %v1917_v7 = vpop.eup %1916 }
 0x612   : > { %v1919_v8 = vpop.eup %1918  ;;  %1699 = vmatprep.mubr.msk.f32.mxu0 %vm479_vm5, %v1917_v7 }
 0x613   : > { %1700 = vmatmul.mubr.msk.f32.vlgmr.msra.gmra.mrb[6].mxu0 %vm479_vm5, %v1919_v8 }
 0x614   : > { %1764 = vmatpush3.bf16.msra.mxu0 %v1761_v31 }
 0x615   : > { %1766 = vmatprep.subr.bf16.mxu0 %v1765_v33 }
 0x618   : > { %1768 = vmatpush3.bf16.msra.mxu0 %v1765_v33 }
 0x686   : > { %v1063_v18 = vpop.permute.xlu1 %1062 }
 0x687   : > { %v1066_v26 = vmul.f32 %v1687_v58, %v1063_v18 }
 0x68a   : > { %v1058_v25 = vpop.permute.xlu1 %1057 }
 0x68b   : > { %v1065_v27 = vmul.f32 %v1058_v25, %v1042_v60 }
 0x6e6   : > { %v1701_v10 = vpop.f32.mrb[6].mxu0 }
 0x6e7   : > { %v1296_v13 = vadd.f32 1e-06, %v1701_v10  ;;  %v1286_v14 = vpop.f32.mrb[7].mxu0 }
 0x6e8   : > { %v1295_v21 = vadd.f32 1e-06, %v1286_v14 }
 0x6e9   : > { %1920 = vrcp.f32 %v1296_v13 }
 0x6ea   : > { %1922 = vrcp.f32 %v1295_v21 }
 0x6eb   : > { %1924 = vrcp.f32 %v562_v41 }
 0x6ec   : > { %1926 = vrcp.f32 %v561_v15 }
 0x6f3   : > { %v1921_v16 = vpop.eup %1920 }
 0x6f4   : > { %v1923_v17 = vpop.eup %1922  ;;  %1306 = vperm.xlu1 %1895, %v1921_v16  }
 0x6f5   : > { %1301 = vperm.xlu0 %1894, %v1923_v17   ;;  %v1925_v19 = vpop.eup %1924 }
 0x6f6   : > { %v1927_v22 = vpop.eup %1926 }
 0x6f8   : > { %572 = vperm.xlu1 %1895, %v1925_v19  }
 0x6f9   : > { %567 = vperm.xlu0 %1894, %v1927_v22  }
 0x6fc   : > { %1315 = vrot.lane.b32.xlu1 %v822_v23, %s2103_s5 }
 0x6fd   : > { %1313 = vrot.lane.b32.xlu0 %v821_v24, %s2103_s5 }
 0x700   : > { %1323 = vrot.lane.b32.xlu1 %v1066_v26, %s2104_s9 }
 0x701   : > { %1321 = vrot.lane.b32.xlu0 %v1065_v27, %s2104_s9 }
 0x773   : > { %v1307_v34 = vpop.permute.xlu1 %1306 }
 0x774   : > { %v1310_v36 = vmul.f32 %v1701_v10, %v1307_v34  ;;  %v1302_v37 = vpop.permute.xlu0 %1301 }
 0x775   : > { %v1309_v38 = vmul.f32 %v1302_v37, %v1286_v14 }
 0x776   : > { %1331 = vrot.lane.b32.xlu1 %v1310_v36, %s2105_s24 }
 0x777   : > { %1329 = vrot.lane.b32.xlu0 %v1309_v38, %s2105_s24  ;;  %v573_v39 = vpop.permute.xlu1 %572 }
 0x778   : > { %v568_v40 = vpop.permute.xlu0 %567  ;;  %v576_v46 = vmul.f32 %v2456_v4, %v573_v39  ;;  %v1581_v4 = vld [vmem:[%s2569_s3] ss:$0 sm:$0xff] }
 0x779   : > { %v575_v9 = vmul.f32 %v568_v40, %v2458_v5 }
 0x77b   : > { %v1316_v42 = vpop.permute.xlu1 %1315 }
 0x77c   : > { %v1314_v43 = vpop.permute.xlu0 %1313  ;;  %v1336_v11 = vsel %vm335_vm1, %v576_v46, %v1316_v42 }
 0x77d   : > { %v1335_v47 = vsel %vm335_vm1, %v575_v9, %v1314_v43 }
 0x77f   : > { %v1324_v44 = vpop.permute.xlu1 %1323 }
 0x780   : > { %v1322_v45 = vpop.permute.xlu0 %1321  ;;  %v1338_v51 = vsel %vm479_vm5, %v1336_v11, %v1324_v44 }
 0x781   : > { %v1337_v49 = vsel %vm479_vm5, %v1335_v47, %v1322_v45 }
 0x7e8   : > { %v1332_v48 = vpop.permute.xlu1 %1331 }
 0x7e9   : > { %v1330_v50 = vpop.permute.xlu0 %1329  ;;  %v1341_v53 = vsel %vm1339_vm6, %v1338_v51, %v1332_v48 }
 0x7ea   : > { %v1340_v52 = vsel %vm1339_vm6, %v1337_v49, %v1330_v50 }
 0x7eb   : > { %1710 = vmatprep.mubr.msk.f32.mxu0 %vm251_vm0, %v1340_v52 }
 0x7ec   : > { %1711 = vmatmul.mubr.msk.f32.vlgmr.msra.gmra.mrb[8].mxu0 %vm251_vm0, %v1341_v53 }
 0x8bf   : > { %v1712_v5 = vpop.f32.mrb[8].mxu0 }
 0x8c0   : > { %v1431_v54 = vadd.f32 %v1712_v5, %v1581_v4  ;;  %v1425_v55 = vpop.f32.mrb[9].mxu0 }
 0x8c1   : > { %v1426_v56 = vadd.f32 %v1581_v4, %v1425_v55 }
 0x8c2   : > { %1435 = vst.msk [vmem:[%s244_s23 + $0x8] sm:$0xff] %vm251_vm0, %v1431_v54 }
 0x8c3   : > { %1434 = vst.msk [vmem:[%s244_s23] sm:$0xff] %vm251_vm0, %v1426_v56 }
 0x8c4   : > { %2027 = shalt.err (!%p2024_p1)
}
 0x8c5   : > { %s2028_s29 = scalar_lea.hbm %s2519_s7, 256  ;;  %s2032_s25 = scalar_lea.hbm %s2570_s4, 512 }
 0x8c6   : > { %p2029_p13 = scmp.ne.s32.totalorder %s2519_s7, %s2028_s29  ;;  %p2033_p4 = scmp.lt.u32.totalorder %s2519_s7, %s2570_s4 }
 0x8c7   : > { %p2034_p5 = scmp.lt.u32.totalorder %s2032_s25, %s2028_s29  ;;  %p2036_p11 = scmp.lt.u32.totalorder %s2028_s29, %s2519_s7 }
 0x8c8   : > { %p2030_p6 = pnand %p2029_p13, %p2586_p0 }
 0x8c9   : > { %p2035_p8 = por %p2034_p5, %p2033_p4 }
 0x8ca   : > { %p2031_p10 = pneg %p2030_p6 }
 0x8cb   : > { %p2037_p2 = por %p2036_p11, %p2035_p8 }
 0x8cd   : > { %p2038_p3 = pnand %p2037_p2, %p2031_p10 }
 0x8cf   : > { %2041 = shalt.err (!%p2038_p3)
}
 0x8d0   : > { %s2107_s12 = smov 128  }
 0x8d1   : > { %1779 = dma.vmem_to_hbm [thread:$0]  (%p2586_p0), %s2514_s11, 256, %s2519_s7, %s1437_s10, %s2107_s12, %s2107_s12, %s2103_s5  }
 0x8d2 PF: > { %s1465_s30 = sand.u32 1, %s2072_s15   ;;  %p2587_p7 = scmp.ne.s32.totalorder %s2575_s22, 0 }
 0x8d3   : > { %p2588_p9 = scmp.ge.s32.totalorder %s2084_s18, 2  ;;  %s1466_s6 = scalar_lea.sflag [#allocation4], %s1465_s30 }
 0x8d5   : > { %p1793_p12 = pnand %p2588_p9, %p2587_p7 }
 0x8d7   : > { %2067 = dma.done.wait (!%p1793_p12), %s1466_s6, 256  }
 0x8d8   : > { %2069 = vsyncadd (!%p1793_p12), %s1466_s6, 4294967040  ;;  %p18_p1 = scmp.ge.s32.totalorder %s2249_s26, 4   ;;  %s2589_s15 = smov %s2076_s16 }
 0x8d9   : > { %s2590_s16 = smov %s2080_s17  ;;  %s2591_s17 = smov %s2265_s14 }
 0x8da   : > { %s2592_s18 = smov %s2249_s26  ;;  %20 = sbr.rel (!%p18_p1) target bundleno = 6 (0x6), region = 89 }
 0x8e1   :  { %1471 = vsyncpa [#allocation3], 1 }
 0x8e2   :  { %1473 = vsyncpa [#allocation3 + $0x1], 1 }
 0x8e3   :  { %1474 = vsyncpa [#allocation6], 1 }
 0x8e4   :  { %1475 = vsyncpa [#allocation4], 1 }
 0x8e5   :  { %1477 = vsyncpa [#allocation4 + $0x1], 1 }

</bundles_post_ra>
